<compile_context>
chip_gen: v7x
topology: tpu7x:2x2x1
jax: 0.10.0
libtpu: 0.0.40
codegen_flags: <defaults>
</compile_context>

<pallas_src>
import jax
import jax.numpy as jnp
from jax import lax
from jax.experimental import pallas as pl
from jax.experimental.pallas import tpu as pltpu

RELU_SLOPE = 0.2


def _round_up(x, m):
    return ((x + m - 1) // m) * m


def trunk_kernel(x_ref, w0_ref, ws_ref, be_ref, o_ref):
    """Fused 7-layer MLP on one batch tile.

    Activations live as (features, tm) with the batch dim in lanes, so every matmul
    operand / store in the kernel is lane-dense.  x arrives untransposed as (tm, d_in);
    layer 0 folds the transpose into its dot (contract dim 1 of both operands).
    be_ref packs [b0..b6, eps1, eps2] as columns of an (H, 9) block.
    """
    f32 = jnp.float32

    def leaky(z):
        return jnp.where(z >= 0, z, RELU_SLOPE * z)

    def bias(j):                              # (H, 1) column, broadcast over lanes
        return be_ref[:, j:j + 1]

    def dense(j, h):                          # layers 1..6 from the stacked weights
        w = ws_ref[j - 1]
        return jnp.dot(w, h.astype(w.dtype), preferred_element_type=f32) + bias(j)

    # Layer 0: W0 (H, d_in) contracted with x_blk (tm, d_in) on dim 1 -> (H, tm).
    x = x_ref[...].astype(w0_ref.dtype)
    h = lax.dot_general(w0_ref[...], x, (((1,), (1,)), ((), ())),
                        preferred_element_type=f32) + bias(0)
    h = leaky(h)

    h = leaky(dense(1, h))
    h = leaky(dense(2, h))

    # Discontinuous layers: LeakyReLU(z) + eps * heaviside(z, values=0)  (0 at z == 0).
    z = dense(3, h)
    h = leaky(z) + jnp.where(z > 0, be_ref[:, 7:8], 0.0)
    z = dense(4, h)
    h = leaky(z) + jnp.where(z > 0, be_ref[:, 8:9], 0.0)

    h = leaky(dense(5, h))
    z = dense(6, h)
    o_ref[...] = z[:o_ref.shape[0], :].astype(o_ref.dtype)


def trunk_net_discon(x, weights, biases, eps1, eps2, *, tm=2048,
                     use_bf16=False, feature_major_output=False):
    """Forward pass. x: (M, layer_sizes[0]); returns (M, layer_sizes[-1]) by default
    (or (layer_sizes[-1], M) if feature_major_output=True, which skips the final transpose)."""
    M, d_in = x.shape
    assert len(weights) == 7 and len(biases) == 7
    assert int(weights[0].shape[1]) == d_in
    d_out = int(weights[6].shape[0])
    H = max(int(w.shape[0]) for w in weights)
    # The module's eps broadcasting requires eps_num == width of layers 3/4 outputs.
    assert int(jnp.size(eps1)) == int(weights[3].shape[0]), "eps_num must match layer-3 width"
    assert int(jnp.size(eps2)) == int(weights[4].shape[0]), "eps_num must match layer-4 width"

    w_dtype = jnp.bfloat16 if use_bf16 else jnp.float32

    def pad2(a, rows, cols):
        r, c = a.shape
        return a if (r == rows and c == cols) else jnp.pad(a, ((0, rows - r), (0, cols - c)))

    def pad_vec(v):
        v = jnp.asarray(v, dtype=jnp.float32).reshape(-1)
        return v if v.shape[0] == H else jnp.pad(v, (0, H - v.shape[0]))

    # Packed, zero-padded parameters (padding is exact: zero weights/biases keep the
    # extra rows at 0 through leaky/heaviside, and zero columns ignore them downstream).
    w0p = pad2(jnp.asarray(weights[0], dtype=w_dtype), H, d_in)                  # (H, d_in)
    ws = jnp.stack([pad2(jnp.asarray(w, dtype=w_dtype), H, H)
                    for w in weights[1:]])                                       # (6, H, H)
    be = jnp.stack([pad_vec(b) for b in biases] + [pad_vec(eps1), pad_vec(eps2)],
                   axis=1)                                                       # (H, 9)

    # M-tile: large (amortize grid-step overhead), multiple of 128 (lane-dense output),
    # but no larger than M needs; give v7x's two TensorCores >=2 parallel steps.
    tm = max(128, min(int(tm), 4096))
    tm = _round_up(tm, 128)
    tm = min(tm, _round_up(M, 128))
    if _round_up(M, tm) // tm < 2 and M > 128:
        tm = min(tm, _round_up(pl.cdiv(M, 2), 128))
    m_pad = _round_up(M, tm)

    x_in = x if m_pad == M else jnp.pad(x, ((0, m_pad - M), (0, 0)))

    flops = 2 * m_pad * sum(int(w.shape[0]) * int(w.shape[1]) for w in weights)
    bytes_accessed = int(x_in.size) * x_in.dtype.itemsize \
        + d_out * m_pad * x.dtype.itemsize \
        + (int(w0p.size) + int(ws.size)) * jnp.dtype(w_dtype).itemsize \
        + int(be.size) * 4

    # NOTE: the parameter specs are grid-invariant; Pallas only re-fetches on block-index
    # change, so they stay VMEM-resident across the whole grid.
    out_t = pl.pallas_call(
        trunk_kernel,
        out_shape=jax.ShapeDtypeStruct((d_out, m_pad), x.dtype),
        grid=(m_pad // tm,),
        in_specs=[
            pl.BlockSpec((tm, d_in), lambda i: (i, 0)),     # x rows, no host transpose
            pl.BlockSpec((H, d_in), lambda i: (0, 0)),      # W0
            pl.BlockSpec((6, H, H), lambda i: (0, 0, 0)),   # W1..W6 stacked
            pl.BlockSpec((H, 9), lambda i: (0, 0)),         # biases 0..6 | eps1 | eps2
        ],
        out_specs=pl.BlockSpec((d_out, tm), lambda i: (0, i)),
        compiler_params=pltpu.CompilerParams(dimension_semantics=("parallel",)),
        cost_estimate=pl.CostEstimate(flops=flops, transcendentals=0,
                                      bytes_accessed=int(bytes_accessed)),
    )(x_in, w0p, ws, be)

    out_t = out_t[:, :M]
    if feature_major_output:
        return out_t                     # (d_out, M): avoids the output transpose entirely
    return jnp.transpose(out_t)          # (M, d_out) to match the PyTorch module


def trunk_net_discon_ref(x, weights, biases, eps1, eps2):
    """Pure-JAX reference for validation (matches the PyTorch forward)."""

    def leaky(z):
        return jnp.where(z >= 0, z, RELU_SLOPE * z)

    def heaviside(z):
        return (z > 0).astype(z.dtype)   # torch.heaviside(z, values=0.0)

    def dense(i, h):
        return jnp.dot(h, weights[i].T, precision=lax.Precision.HIGHEST) + biases[i]

    h = x
    h = leaky(dense(0, h))
    h = leaky(dense(1, h))
    h = leaky(dense(2, h))
    z = dense(3, h)
    h = leaky(z) + eps1 * heaviside(z)
    z = dense(4, h)
    h = leaky(z) + eps2 * heaviside(z)
    h = leaky(dense(5, h))
    return dense(6, h)


if __name__ == "__main__":
    # 7 Linear layers; eps_num equals the width of the layer-3/4 outputs so the epsilon
    # broadcasting matches the module.
    layer_sizes = [8, 32, 32, 32, 32, 32, 32, 32]
    eps_num = 32
    batch = 256

    keys = jax.random.split(jax.random.PRNGKey(0), 2 * (len(layer_sizes) - 1) + 3)
    weights, biases = [], []
    k = 0
    for i in range(len(layer_sizes) - 1):
        fan_in, fan_out = layer_sizes[i], layer_sizes[i + 1]
        std = (2.0 / (fan_in + fan_out)) ** 0.5            # xavier_normal_, gain=1
        weights.append(std * jax.random.normal(keys[k], (fan_out, fan_in), jnp.float32)); k += 1
        # Module inits bias to 0; use small nonzero values to exercise the bias path.
        biases.append(0.1 * jax.random.normal(keys[k], (fan_out,), jnp.float32)); k += 1
    eps1 = jax.random.normal(keys[k], (1, eps_num), jnp.float32); k += 1
    eps2 = jax.random.normal(keys[k], (1, eps_num), jnp.float32); k += 1
    x = jax.random.normal(keys[k], (batch, layer_sizes[0]), jnp.float32)

    out = jax.block_until_ready(trunk_net_discon(x, weights, biases, eps1, eps2))
    ref = jax.block_until_ready(trunk_net_discon_ref(x, weights, biases, eps1, eps2))

    assert out.shape == (batch, layer_sizes[-1]), out.shape
    max_err = float(jnp.max(jnp.abs(out - ref)))
    assert jnp.allclose(out, ref, atol=1e-3, rtol=1e-3), max_err
    print("KERNEL_OK")
</pallas_src>

<mosaic_0001>
module attributes {stable_mosaic.version = 11 : i64} {
  func.func @trunk_kernel(%arg0: i32, %arg1: memref<128x8xf32, #tpu.memory_space<vmem>>, %arg2: memref<32x8xf32, #tpu.memory_space<vmem>>, %arg3: memref<6x32x32xf32, #tpu.memory_space<vmem>>, %arg4: memref<32x9xf32, #tpu.memory_space<vmem>>, %arg5: memref<32x128xf32, #tpu.memory_space<vmem>>) attributes {dimension_semantics = [#tpu.dimension_semantics<parallel>], iteration_bounds = array<i64: 2>, scalar_prefetch = 0 : i64, scratch_operands = 0 : i64, tpu.core_type = #tpu.core_type<tc>, window_params = [{transform_indices = @transform_0, window_bounds = array<i64: 128, 8>}, {pipeline_mode = #tpu.pipeline_mode<synchronous>, transform_indices = @transform_1, window_bounds = array<i64: 32, 8>}, {pipeline_mode = #tpu.pipeline_mode<synchronous>, transform_indices = @transform_2, window_bounds = array<i64: 6, 32, 32>}, {pipeline_mode = #tpu.pipeline_mode<synchronous>, transform_indices = @transform_3, window_bounds = array<i64: 32, 9>}, {transform_indices = @transform_4, window_bounds = array<i64: 32, 128>}]} {
    %c0 = arith.constant 0 : index
    %c0_0 = arith.constant 0 : index
    %0 = vector.load %arg1[%c0, %c0_0] : memref<128x8xf32, #tpu.memory_space<vmem>>, vector<128x8xf32>
    %c0_1 = arith.constant 0 : index
    %c0_2 = arith.constant 0 : index
    %1 = vector.load %arg2[%c0_1, %c0_2] : memref<32x8xf32, #tpu.memory_space<vmem>>, vector<32x8xf32>
    %cst = arith.constant dense<0.000000e+00> : vector<32x128xf32>
    %2 = tpu.matmul %1, %0, %cst {dimension_numbers = #tpu.dot_dimension_numbers<[1], [1], [0], [0], [0, 0, 1, 0], [], []>} : vector<32x8xf32>, vector<128x8xf32>, vector<32x128xf32> -> vector<32x128xf32>
    %c0_3 = arith.constant 0 : index
    %c0_4 = arith.constant 0 : index
    %3 = vector.load %arg4[%c0_3, %c0_4] : memref<32x9xf32, #tpu.memory_space<vmem>>, vector<32x1xf32>
    %4 = vector.broadcast %3 : vector<32x1xf32> to vector<32x128xf32>
    %5 = arith.addf %2, %4 : vector<32x128xf32>
    %cst_5 = arith.constant 0.000000e+00 : f32
    %6 = vector.broadcast %cst_5 : f32 to vector<32x128xf32>
    %7 = arith.cmpf oge, %5, %6 : vector<32x128xf32>
    %cst_6 = arith.constant 2.000000e-01 : f32
    %8 = vector.broadcast %cst_6 : f32 to vector<32x128xf32>
    %9 = arith.mulf %8, %5 : vector<32x128xf32>
    %10 = arith.select %7, %5, %9 : vector<32x128xi1>, vector<32x128xf32>
    %c0_7 = arith.constant 0 : index
    %c0_8 = arith.constant 0 : index
    %c0_9 = arith.constant 0 : index
    %11 = vector.load %arg3[%c0_7, %c0_8, %c0_9] : memref<6x32x32xf32, #tpu.memory_space<vmem>>, vector<1x32x32xf32>
    %12 = vector.shape_cast %11 : vector<1x32x32xf32> to vector<32x32xf32>
    %cst_10 = arith.constant dense<0.000000e+00> : vector<32x128xf32>
    %13 = tpu.matmul %12, %10, %cst_10 {dimension_numbers = #tpu.dot_dimension_numbers<[1], [0], [0], [1], [0, 0, 1, 1], [], []>} : vector<32x32xf32>, vector<32x128xf32>, vector<32x128xf32> -> vector<32x128xf32>
    %c0_11 = arith.constant 0 : index
    %c1 = arith.constant 1 : index
    %14 = vector.load %arg4[%c0_11, %c1] : memref<32x9xf32, #tpu.memory_space<vmem>>, vector<32x1xf32>
    %15 = vector.broadcast %14 : vector<32x1xf32> to vector<32x128xf32>
    %16 = arith.addf %13, %15 : vector<32x128xf32>
    %cst_12 = arith.constant 0.000000e+00 : f32
    %17 = vector.broadcast %cst_12 : f32 to vector<32x128xf32>
    %18 = arith.cmpf oge, %16, %17 : vector<32x128xf32>
    %cst_13 = arith.constant 2.000000e-01 : f32
    %19 = vector.broadcast %cst_13 : f32 to vector<32x128xf32>
    %20 = arith.mulf %19, %16 : vector<32x128xf32>
    %21 = arith.select %18, %16, %20 : vector<32x128xi1>, vector<32x128xf32>
    %c1_14 = arith.constant 1 : index
    %c0_15 = arith.constant 0 : index
    %c0_16 = arith.constant 0 : index
    %22 = vector.load %arg3[%c1_14, %c0_15, %c0_16] : memref<6x32x32xf32, #tpu.memory_space<vmem>>, vector<1x32x32xf32>
    %23 = vector.shape_cast %22 : vector<1x32x32xf32> to vector<32x32xf32>
    %cst_17 = arith.constant dense<0.000000e+00> : vector<32x128xf32>
    %24 = tpu.matmul %23, %21, %cst_17 {dimension_numbers = #tpu.dot_dimension_numbers<[1], [0], [0], [1], [0, 0, 1, 1], [], []>} : vector<32x32xf32>, vector<32x128xf32>, vector<32x128xf32> -> vector<32x128xf32>
    %c0_18 = arith.constant 0 : index
    %c2 = arith.constant 2 : index
    %25 = vector.load %arg4[%c0_18, %c2] : memref<32x9xf32, #tpu.memory_space<vmem>>, vector<32x1xf32>
    %26 = vector.broadcast %25 : vector<32x1xf32> to vector<32x128xf32>
    %27 = arith.addf %24, %26 : vector<32x128xf32>
    %cst_19 = arith.constant 0.000000e+00 : f32
    %28 = vector.broadcast %cst_19 : f32 to vector<32x128xf32>
    %29 = arith.cmpf oge, %27, %28 : vector<32x128xf32>
    %cst_20 = arith.constant 2.000000e-01 : f32
    %30 = vector.broadcast %cst_20 : f32 to vector<32x128xf32>
    %31 = arith.mulf %30, %27 : vector<32x128xf32>
    %32 = arith.select %29, %27, %31 : vector<32x128xi1>, vector<32x128xf32>
    %c2_21 = arith.constant 2 : index
    %c0_22 = arith.constant 0 : index
    %c0_23 = arith.constant 0 : index
    %33 = vector.load %arg3[%c2_21, %c0_22, %c0_23] : memref<6x32x32xf32, #tpu.memory_space<vmem>>, vector<1x32x32xf32>
    %34 = vector.shape_cast %33 : vector<1x32x32xf32> to vector<32x32xf32>
    %cst_24 = arith.constant dense<0.000000e+00> : vector<32x128xf32>
    %35 = tpu.matmul %34, %32, %cst_24 {dimension_numbers = #tpu.dot_dimension_numbers<[1], [0], [0], [1], [0, 0, 1, 1], [], []>} : vector<32x32xf32>, vector<32x128xf32>, vector<32x128xf32> -> vector<32x128xf32>
    %c0_25 = arith.constant 0 : index
    %c3 = arith.constant 3 : index
    %36 = vector.load %arg4[%c0_25, %c3] : memref<32x9xf32, #tpu.memory_space<vmem>>, vector<32x1xf32>
    %37 = vector.broadcast %36 : vector<32x1xf32> to vector<32x128xf32>
    %38 = arith.addf %35, %37 : vector<32x128xf32>
    %cst_26 = arith.constant 0.000000e+00 : f32
    %39 = vector.broadcast %cst_26 : f32 to vector<32x128xf32>
    %40 = arith.cmpf oge, %38, %39 : vector<32x128xf32>
    %cst_27 = arith.constant 2.000000e-01 : f32
    %41 = vector.broadcast %cst_27 : f32 to vector<32x128xf32>
    %42 = arith.mulf %41, %38 : vector<32x128xf32>
    %43 = arith.select %40, %38, %42 : vector<32x128xi1>, vector<32x128xf32>
    %cst_28 = arith.constant 0.000000e+00 : f32
    %44 = vector.broadcast %cst_28 : f32 to vector<32x128xf32>
    %45 = arith.cmpf ogt, %38, %44 : vector<32x128xf32>
    %c0_29 = arith.constant 0 : index
    %c7 = arith.constant 7 : index
    %46 = vector.load %arg4[%c0_29, %c7] : memref<32x9xf32, #tpu.memory_space<vmem>>, vector<32x1xf32>
    %cst_30 = arith.constant 0.000000e+00 : f32
    %47 = vector.shape_cast %46 : vector<32x1xf32> to vector<32x1xf32>
    %48 = vector.broadcast %47 : vector<32x1xf32> to vector<32x128xf32>
    %49 = vector.broadcast %cst_30 : f32 to vector<32x128xf32>
    %50 = arith.select %45, %48, %49 : vector<32x128xi1>, vector<32x128xf32>
    %51 = arith.addf %43, %50 : vector<32x128xf32>
    %c3_31 = arith.constant 3 : index
    %c0_32 = arith.constant 0 : index
    %c0_33 = arith.constant 0 : index
    %52 = vector.load %arg3[%c3_31, %c0_32, %c0_33] : memref<6x32x32xf32, #tpu.memory_space<vmem>>, vector<1x32x32xf32>
    %53 = vector.shape_cast %52 : vector<1x32x32xf32> to vector<32x32xf32>
    %cst_34 = arith.constant dense<0.000000e+00> : vector<32x128xf32>
    %54 = tpu.matmul %53, %51, %cst_34 {dimension_numbers = #tpu.dot_dimension_numbers<[1], [0], [0], [1], [0, 0, 1, 1], [], []>} : vector<32x32xf32>, vector<32x128xf32>, vector<32x128xf32> -> vector<32x128xf32>
    %c0_35 = arith.constant 0 : index
    %c4 = arith.constant 4 : index
    %55 = vector.load %arg4[%c0_35, %c4] : memref<32x9xf32, #tpu.memory_space<vmem>>, vector<32x1xf32>
    %56 = vector.broadcast %55 : vector<32x1xf32> to vector<32x128xf32>
    %57 = arith.addf %54, %56 : vector<32x128xf32>
    %cst_36 = arith.constant 0.000000e+00 : f32
    %58 = vector.broadcast %cst_36 : f32 to vector<32x128xf32>
    %59 = arith.cmpf oge, %57, %58 : vector<32x128xf32>
    %cst_37 = arith.constant 2.000000e-01 : f32
    %60 = vector.broadcast %cst_37 : f32 to vector<32x128xf32>
    %61 = arith.mulf %60, %57 : vector<32x128xf32>
    %62 = arith.select %59, %57, %61 : vector<32x128xi1>, vector<32x128xf32>
    %cst_38 = arith.constant 0.000000e+00 : f32
    %63 = vector.broadcast %cst_38 : f32 to vector<32x128xf32>
    %64 = arith.cmpf ogt, %57, %63 : vector<32x128xf32>
    %c0_39 = arith.constant 0 : index
    %c8 = arith.constant 8 : index
    %65 = vector.load %arg4[%c0_39, %c8] : memref<32x9xf32, #tpu.memory_space<vmem>>, vector<32x1xf32>
    %cst_40 = arith.constant 0.000000e+00 : f32
    %66 = vector.shape_cast %65 : vector<32x1xf32> to vector<32x1xf32>
    %67 = vector.broadcast %66 : vector<32x1xf32> to vector<32x128xf32>
    %68 = vector.broadcast %cst_40 : f32 to vector<32x128xf32>
    %69 = arith.select %64, %67, %68 : vector<32x128xi1>, vector<32x128xf32>
    %70 = arith.addf %62, %69 : vector<32x128xf32>
    %c4_41 = arith.constant 4 : index
    %c0_42 = arith.constant 0 : index
    %c0_43 = arith.constant 0 : index
    %71 = vector.load %arg3[%c4_41, %c0_42, %c0_43] : memref<6x32x32xf32, #tpu.memory_space<vmem>>, vector<1x32x32xf32>
    %72 = vector.shape_cast %71 : vector<1x32x32xf32> to vector<32x32xf32>
    %cst_44 = arith.constant dense<0.000000e+00> : vector<32x128xf32>
    %73 = tpu.matmul %72, %70, %cst_44 {dimension_numbers = #tpu.dot_dimension_numbers<[1], [0], [0], [1], [0, 0, 1, 1], [], []>} : vector<32x32xf32>, vector<32x128xf32>, vector<32x128xf32> -> vector<32x128xf32>
    %c0_45 = arith.constant 0 : index
    %c5 = arith.constant 5 : index
    %74 = vector.load %arg4[%c0_45, %c5] : memref<32x9xf32, #tpu.memory_space<vmem>>, vector<32x1xf32>
    %75 = vector.broadcast %74 : vector<32x1xf32> to vector<32x128xf32>
    %76 = arith.addf %73, %75 : vector<32x128xf32>
    %cst_46 = arith.constant 0.000000e+00 : f32
    %77 = vector.broadcast %cst_46 : f32 to vector<32x128xf32>
    %78 = arith.cmpf oge, %76, %77 : vector<32x128xf32>
    %cst_47 = arith.constant 2.000000e-01 : f32
    %79 = vector.broadcast %cst_47 : f32 to vector<32x128xf32>
    %80 = arith.mulf %79, %76 : vector<32x128xf32>
    %81 = arith.select %78, %76, %80 : vector<32x128xi1>, vector<32x128xf32>
    %c5_48 = arith.constant 5 : index
    %c0_49 = arith.constant 0 : index
    %c0_50 = arith.constant 0 : index
    %82 = vector.load %arg3[%c5_48, %c0_49, %c0_50] : memref<6x32x32xf32, #tpu.memory_space<vmem>>, vector<1x32x32xf32>
    %83 = vector.shape_cast %82 : vector<1x32x32xf32> to vector<32x32xf32>
    %cst_51 = arith.constant dense<0.000000e+00> : vector<32x128xf32>
    %84 = tpu.matmul %83, %81, %cst_51 {dimension_numbers = #tpu.dot_dimension_numbers<[1], [0], [0], [1], [0, 0, 1, 1], [], []>} : vector<32x32xf32>, vector<32x128xf32>, vector<32x128xf32> -> vector<32x128xf32>
    %c0_52 = arith.constant 0 : index
    %c6 = arith.constant 6 : index
    %85 = vector.load %arg4[%c0_52, %c6] : memref<32x9xf32, #tpu.memory_space<vmem>>, vector<32x1xf32>
    %86 = vector.broadcast %85 : vector<32x1xf32> to vector<32x128xf32>
    %87 = arith.addf %84, %86 : vector<32x128xf32>
    %c0_53 = arith.constant 0 : index
    %c0_54 = arith.constant 0 : index
    %88 = vector.load %arg5[%c0_53, %c0_54] : memref<32x128xf32, #tpu.memory_space<vmem>>, vector<32x128xf32>
    tpu.vector_store %arg5[%c0_53, %c0_54], %87 {strides = array<i32>} : memref<32x128xf32, #tpu.memory_space<vmem>>, vector<32x128xf32>,
    return
  }
  func.func @transform_0(%arg0: i32) -> (i32, i32) {
    %c0_i32 = arith.constant 0 : i32
    %c0_i32_0 = arith.constant 0 : i32
    return %arg0, %c0_i32 : i32, i32
  }
  func.func @transform_1(%arg0: i32) -> (i32, i32) {
    %c0_i32 = arith.constant 0 : i32
    %c0_i32_0 = arith.constant 0 : i32
    %c0_i32_1 = arith.constant 0 : i32
    return %c0_i32, %c0_i32_0 : i32, i32
  }
  func.func @transform_2(%arg0: i32) -> (i32, i32, i32) {
    %c0_i32 = arith.constant 0 : i32
    %c0_i32_0 = arith.constant 0 : i32
    %c0_i32_1 = arith.constant 0 : i32
    %c0_i32_2 = arith.constant 0 : i32
    return %c0_i32, %c0_i32_0, %c0_i32_1 : i32, i32, i32
  }
  func.func @transform_3(%arg0: i32) -> (i32, i32) {
    %c0_i32 = arith.constant 0 : i32
    %c0_i32_0 = arith.constant 0 : i32
    %c0_i32_1 = arith.constant 0 : i32
    return %c0_i32, %c0_i32_0 : i32, i32
  }
  func.func @transform_4(%arg0: i32) -> (i32, i32) {
    %c0_i32 = arith.constant 0 : i32
    %c0_i32_0 = arith.constant 0 : i32
    return %c0_i32, %arg0 : i32, i32
  }
}

</mosaic_0001>

<bundles_post_ra>
// kernel: tpu_custom_call.1
= control target key start
LH: loop header
LB: loop body
LE: loop exit
PB: predicated region body
PF: predicated region fallthrough
CT: control target
= control target key end

     0   :  { %9 = vsyncpa [#allocation3], 0  ;;  %s2161_s0 = inlined_call_operand.vmem [shape: f32[256,8], index: 0, kind: input, shape index: {}]   ;;  %s2162_s1 = inlined_call_operand.vmem [shape: f32[32,8], index: 1, kind: input, shape index: {}]   ;;  %s2163_s2 = inlined_call_operand.vmem [shape: f32[6,32,32], index: 2, kind: input, shape index: {}]   ;;  %s2164_s3 = inlined_call_operand.vmem [shape: f32[32,9], index: 3, kind: input, shape index: {}]   ;;  %s2165_s4 = inlined_call_operand.hbm [shape: f32[32,256], index: 4, kind: output, shape index: {}]  }
   0x1   :  { %11 = vsyncpa [#allocation3 + $0x1], 0  ;;  %s1835_s15 = smov 0   ;;  %s1837_s16 = smov 0  }
   0x2   :  { %s1839_s17 = smov 0   ;;  %s1841_s18 = smov 0  }
   0x3 LB: > { %s1856_s19 = sadd.s32 4294967295, %s1795_s18   ;;  %s1303_s20 = sadd.s32 4294967294, %s1795_s18   ;;  %s1795_s18 = sphi %s1841_s18, %s2173_s18   ;;  %s1791_s17 = sphi %s1839_s17, %s2172_s17   ;;  %s1787_s16 = sphi %s1837_s16, %s2171_s16   ;;  %s1783_s15 = sphi %s1835_s15, %s2170_s15  }
   0x4   : > { %s1860_s21 = sadd.s32 1, %s1795_s18   ;;  %s113_s22 = sadd.s32 1, %s1791_s17 }
   0x5   : > { %s110_s23 = ssub.s32 %s1795_s18, %s1860_s21  ;;  %p123_p0 = scmp.ne.s32.totalorder %s1791_s17, %s1787_s16 }
   0x6   : > { %p111_p1 = scmp.eq.s32.totalorder %s110_s23, 0  ;;  %p124_p2 = scmp.eq.s32.totalorder %s1856_s19, 1 }
   0x7   : > { %p129_p3 = scmp.ne.s32.totalorder %s1787_s16, %s1783_s15  ;;  %p130_p4 = scmp.eq.s32.totalorder %s1303_s20, 1 }
   0x8   : > { %s1871_s24 = scalar_select %p111_p1, %s1791_s17, %s113_s22  }
   0x9   : > { %p1873_p5 = por %p124_p2, %p123_p0  ;;  %p1877_p6 = por %p130_p4, %p129_p3 }
   0xa   : > { %p1306_p7 = scmp.ge.s32.totalorder %s1795_s18, 1  ;;  %p166_p8 = scmp.lt.s32.totalorder %s1795_s18, 3 }
   0xc   : > { %p167_p9 = pnand %p1306_p7, %p166_p8 }
   0xd   : > { %s1308_s27 = sshll.u32 (!%p167_p9), %s1856_s19, 4  ;;  %vm242_vm0 = vcmask (!%p167_p9), 64512   ;;  %v214_v0 = vld [vmem:[%s2162_s1] sm:$0xff] (!%p167_p9)  ;;  %v1797_v1 = vmov (!%p167_p9), 0   ;;  %v1897_v3 = vld [vmem:[%s2164_s3 + $0x10] sm:$0xff] (!%p167_p9)  ;;  %v1903_v4 = vld [vmem:[%s2164_s3 + $0x8] sm:$0xff] (!%p167_p9) }
   0xe   : > { %170 = sbr.rel (%p167_p9) target bundleno = 1698 (0x6a2), region = 36  ;;  %p193_p10 = scmp.lt.s32.totalorder (!%p167_p9), %s1308_s27, 31  ;;  %1478 = vmatprep.mubr.msk.f32.mxu0 (!%p167_p9), %vm242_vm0, %v214_v0  ;;  %1715 = vset.pattern.permute.xlu0 (!%p167_p9), %v1797_v1  ;;  %v1891_v2 = vld [vmem:[%s2164_s3] sm:$0xff] (!%p167_p9)  ;;  %v1908_v5 = vld [vmem:[%s2164_s3 + $0x18] sm:$0xff] (!%p167_p9)  ;;  %vm1917_vm1 = vmpackc.low (!%p167_p9), %vm242_vm0, %vm242_vm0  ;;  %vm420_vm2 = vcmask (!%p167_p9), 261120   ;;  %v1798_v35 = vmov (!%p167_p9), 1  }
   0xf   : > { %224 = vperm.xlu0 (!%p167_p9), %1715, %v1891_v2   ;;  %1716 = vset.pattern.permute.xlu1 (!%p167_p9), %v1797_v1  ;;  %v215_v31 = vld [vmem:[%s2162_s1 + $0x8] sm:$0xff] (!%p167_p9)  ;;  %v216_v32 = vld [vmem:[%s2162_s1 + $0x10] sm:$0xff] (!%p167_p9)  ;;  %v217_v33 = vld [vmem:[%s2162_s1 + $0x18] sm:$0xff] (!%p167_p9)  ;;  %v1799_v62 = vmov (!%p167_p9), 2   ;;  %s189_s28 = sand.u32 (!%p167_p9), 1, %s1787_s16   ;;  %s1375_s6 = sshll.u32 (!%p167_p9), %s1856_s19, 7 }
  0x10   : > { %234 = vperm.xlu1 (!%p167_p9), %1716, %v1897_v3   ;;  %v400_v34 = vld [vmem:[%s2163_s2] sm:$0xff] (!%p167_p9)  ;;  %v401_v58 = vld [vmem:[%s2163_s2 + $0x8] sm:$0xff] (!%p167_p9)  ;;  %v402_v59 = vld [vmem:[%s2163_s2 + $0x10] sm:$0xff] (!%p167_p9)  ;;  %s1307_s29 = sshll.u32 (!%p167_p9), %s189_s28, 5  ;;  %s2118_s9 = scalar_lea.hbm (!%p167_p9), %s2165_s4, %s1375_s6 }
  0x11   : > { %1492 = vmatprep.mubr.msk.f32.mxu1 (!%p167_p9), %vm420_vm2, %v400_v34  ;;  %v403_v60 = vld [vmem:[%s2163_s2 + $0x18] sm:$0xff] (!%p167_p9)  ;;  %v1334_v61 = vld [vmem:[%s2163_s2 + $0x20] sm:$0xff] (!%p167_p9)  ;;  %s191_s30 = scalar_lea.vmem (!%p167_p9), [#allocation2], %s1307_s29  ;;  %s2120_s19 = scalar_lea.sflag (!%p167_p9), [#allocation3], %s189_s28 }
  0x12   : > { %s1241_s5 = sshll.u32 (!%p167_p9), %s191_s30, 4  ;;  %s1806_s11 = smov (!%p167_p9), [#allocation2]   ;;  %s2113_s5 = int_to_ptr.vmem [resolvable:$true] %s1241_s5 }
  0x13   : > { %229 = vperm.xlu0 (!%p167_p9), %1715, %v1903_v4   ;;  %s1733_s10 = scalar_lea.vmem (!%p167_p9), %s2113_s5, 512 }
  0x14   : > { %239 = vperm.xlu1 (!%p167_p9), %1716, %v1908_v5   ;;  %p1734_p11 = scmp.ne.s32.totalorder (!%p167_p9), %s2113_s5, %s1733_s10 }
  0x15   : > { %s2175_s27 = smov (!%p193_p10, %s1308_s27), 31 }
  0x16   : > { %s1309_s12 = sshll.u32 %s2175_s27, 3  ;;  %p1735_p12 = pnand %p1734_p11, %p1873_p5 }
  0x17   : > { %s1913_s20 = scalar_lea.vmem %s2161_s0, %s1309_s12  ;;  %1717 = vset.pattern.permute.xlu0 %v1798_v35  ;;  %s1737_s12 = sshll.u32 %s1806_s11, 4  ;;  %s1738_s12 = int_to_ptr.vmem [resolvable:$false] %s1737_s12 }
  0x18   : > { %v198_v7 = vld [vmem:[%s1913_s20] sm:$0xff]  ;;  %v199_v8 = vld [vmem:[%s1913_s20 + $0x8] sm:$0xff]  ;;  %v200_v9 = vld [vmem:[%s1913_s20 + $0x10] sm:$0xff]  ;;  %1718 = vset.pattern.permute.xlu1 %v1798_v35  ;;  %405 = vperm.xlu0 %1717, %v1891_v2   ;;  %p1736_p13 = pneg %p1735_p12  ;;  %s1739_s13 = scalar_lea.vmem %s1738_s12, 1024 }
  0x19   : > { %v1568_v10 = vpack.c.bf16 %v199_v8, %v198_v7  ;;  %v201_v11 = vld [vmem:[%s1913_s20 + $0x18] sm:$0xff]  ;;  %v202_v13 = vld [vmem:[%s1913_s20 + $0x20] sm:$0xff]  ;;  %v203_v14 = vld [vmem:[%s1913_s20 + $0x28] sm:$0xff]  ;;  %409 = vperm.xlu1 %1718, %v1903_v4   ;;  %p1740_p0 = scmp.lt.s32.totalorder %s2113_s5, %s1738_s12  ;;  %p1741_p1 = scmp.lt.s32.totalorder %s1739_s13, %s1733_s10 }
  0x1a   : > { %v1574_v12 = vpack.c.bf16 %v201_v11, %v200_v9  ;;  %v1580_v15 = vpack.c.bf16 %v203_v14, %v202_v13  ;;  %v204_v16 = vld [vmem:[%s1913_s20 + $0x30] sm:$0xff]  ;;  %v205_v17 = vld [vmem:[%s1913_s20 + $0x38] sm:$0xff]  ;;  %v206_v19 = vld [vmem:[%s1913_s20 + $0x40] sm:$0xff] }
  0x1b   : > { %1570 = vmatprep.subr.msk.bf16.mxu0 %vm1917_vm1, %v1568_v10  ;;  %v1586_v18 = vpack.c.bf16 %v205_v17, %v204_v16  ;;  %v207_v20 = vld [vmem:[%s1913_s20 + $0x48] sm:$0xff]  ;;  %v208_v22 = vld [vmem:[%s1913_s20 + $0x50] sm:$0xff]  ;;  %v209_v23 = vld [vmem:[%s1913_s20 + $0x58] sm:$0xff]  ;;  %p1742_p2 = por %p1741_p1, %p1740_p0 }
  0x1c   : > { %1573 = vmatpush3.bf16.xpose.msk.msra.mxu0 %vm1917_vm1, %v1568_v10  ;;  %v1592_v21 = vpack.c.bf16 %v207_v20, %v206_v19  ;;  %v1598_v24 = vpack.c.bf16 %v209_v23, %v208_v22  ;;  %v210_v25 = vld [vmem:[%s1913_s20 + $0x60] sm:$0xff]  ;;  %v211_v26 = vld [vmem:[%s1913_s20 + $0x68] sm:$0xff]  ;;  %v212_v28 = vld [vmem:[%s1913_s20 + $0x70] sm:$0xff]  ;;  %417 = vperm.xlu0 %1717, %v1908_v5  }
  0x1d   : > { %1576 = vmatprep.subr.msk.bf16.mxu0 %vm1917_vm1, %v1574_v12  ;;  %v1604_v27 = vpack.c.bf16 %v211_v26, %v210_v25  ;;  %v213_v29 = vld [vmem:[%s1913_s20 + $0x78] sm:$0xff]  ;;  %413 = vperm.xlu1 %1718, %v1897_v3   ;;  %v1335_v25 = vld [vmem:[%s2163_s2 + $0x28] sm:$0xff]  ;;  %v1336_v26 = vld [vmem:[%s2163_s2 + $0x30] sm:$0xff]  ;;  %p1743_p3 = pnand %p1742_p2, %p1736_p13 }
  0x1e   : > { %v1610_v30 = vpack.c.bf16 %v213_v29, %v212_v28  ;;  %v1342_v28 = vld [vmem:[%s2163_s2 + $0x40] sm:$0xff]  ;;  %v1800_v29 = vmov 3  }
  0x20   : > { %1720 = vset.pattern.permute.xlu0 %v1799_v62 }
  0x21   : > { %1719 = vset.pattern.permute.xlu1 %v1799_v62  ;;  %540 = vperm.xlu0 %1720, %v1903_v4  }
  0x22   : > { %536 = vperm.xlu1 %1719, %v1891_v2  }
  0x24   : > { %1579 = vmatpush3.bf16.xpose.msk.msra.mxu0 %vm1917_vm1, %v1574_v12 }
  0x25   : > { %1582 = vmatprep.subr.msk.bf16.mxu0 %vm1917_vm1, %v1580_v15  ;;  %1721 = vset.pattern.permute.xlu0 %v1800_v29 }
  0x26   : > { %544 = vperm.xlu1 %1719, %v1897_v3   ;;  %666 = vperm.xlu0 %1721, %v1891_v2  }
  0x2a   : > { %548 = vperm.xlu1 %1719, %v1908_v5   ;;  %678 = vperm.xlu0 %1721, %v1908_v5  }
  0x2c   : > { %1585 = vmatpush3.bf16.xpose.msk.msra.mxu0 %vm1917_vm1, %v1580_v15 }
  0x2d   : > { %1588 = vmatprep.subr.msk.bf16.mxu0 %vm1917_vm1, %v1586_v18 }
  0x2e   : > { %1722 = vset.pattern.permute.xlu1 %v1800_v29 }
  0x2f   : > { %670 = vperm.xlu1 %1722, %v1903_v4  }
  0x33   : > { %674 = vperm.xlu1 %1722, %v1897_v3  }
  0x34   : > { %1591 = vmatpush3.bf16.xpose.msk.msra.mxu0 %vm1917_vm1, %v1586_v18 }
  0x35   : > { %1594 = vmatprep.subr.msk.bf16.mxu0 %vm1917_vm1, %v1592_v21 }
  0x3c   : > { %1597 = vmatpush3.bf16.xpose.msk.msra.mxu0 %vm1917_vm1, %v1592_v21 }
  0x3d   : > { %1600 = vmatprep.subr.msk.bf16.mxu0 %vm1917_vm1, %v1598_v24 }
  0x44   : > { %1603 = vmatpush3.bf16.xpose.msk.msra.mxu0 %vm1917_vm1, %v1598_v24 }
  0x45   : > { %1606 = vmatprep.subr.msk.bf16.mxu0 %vm1917_vm1, %v1604_v27 }
  0x4c   : > { %1609 = vmatpush3.bf16.xpose.msk.msra.mxu0 %vm1917_vm1, %v1604_v27  ;;  %v1337_v27 = vld [vmem:[%s2163_s2 + $0x38] sm:$0xff] }
  0x4d   : > { %1612 = vmatprep.subr.msk.bf16.mxu0 %vm1917_vm1, %v1610_v30 }
  0x54   : > { %1615 = vmatpush3.bf16.xpose.msk.msra.mxu0 %vm1917_vm1, %v1610_v30  ;;  %v1801_v30 = vmov 7  }
  0x55   : > { %1723 = vset.pattern.permute.xlu1 %v1801_v30  ;;  %1724 = vset.pattern.permute.xlu0 %v1801_v30 }
  0x56   : > { %795 = vperm.xlu1 %1723, %v1891_v2   ;;  %799 = vperm.xlu0 %1724, %v1903_v4  }
  0x5a   : > { %803 = vperm.xlu1 %1723, %v1897_v3  }
  0x5b   : > { %1479 = vmatmul.mubr.msk.f32.vlgmr.msra.gmra.mrb[0].mxu0 %vm242_vm0, %v215_v31 }
  0x5c   : > { %1481 = vmatprep.mubr.msk.f32.mxu0 %vm242_vm0, %v216_v32 }
  0x5e   : > { %807 = vperm.xlu1 %1723, %v1908_v5  }
  0x5f   : > { %1482 = vmatmul.mubr.msk.f32.gmra.mrb[2].mxu0 %vm242_vm0, %v217_v33 }
  0x8e   : > { %v225_v36 = vpop.permute.xlu0 %224 }
  0x8f   : > { %v235_v37 = vpop.permute.xlu1 %234 }
  0x92   : > { %v230_v38 = vpop.permute.xlu0 %229 }
  0x93   : > { %v240_v44 = vpop.permute.xlu1 %239 }
  0x97   : > { %v406_v63 = vpop.permute.xlu0 %405 }
  0x98   : > { %v410_v0 = vpop.permute.xlu1 %409 }
  0x9b   : > { %v418_v10 = vpop.permute.xlu0 %417 }
  0x9c   : > { %v414_v13 = vpop.permute.xlu1 %413 }
  0xa0   : > { %v541_v33 = vpop.permute.xlu0 %540 }
  0xa1   : > { %v537_v31 = vpop.permute.xlu1 %536 }
  0xa5   : > { %v545_v32 = vpop.permute.xlu1 %544 }
 0x12e   : > { %v1480_v39 = vpop.f32.mrb[0].mxu0 }
 0x12f   : > { %v375_v40 = vadd.f32 %v1480_v39, %v230_v38  ;;  %v369_v41 = vpop.f32.mrb[1].mxu0  ;;  %v549_v39 = vpop.permute.xlu1 %548 }
 0x130   : > { %v370_v42 = vadd.f32 %v369_v41, %v225_v36 }
 0x131   : > { %v393_v43 = vmul.f32 0.2, %v375_v40  ;;  %vm389_vm3 = vcmp.ge.f32.partialorder %v375_v40, 0.0 }
 0x132   : > { %v392_v45 = vmul.f32 0.2, %v370_v42  ;;  %v1483_v46 = vpop.f32.mrb[2].mxu0  ;;  %vm388_vm4 = vcmp.ge.f32.partialorder %v370_v42, 0.0 }
 0x133   : > { %v385_v47 = vadd.f32 %v1483_v46, %v240_v44  ;;  %v379_v48 = vpop.f32.mrb[3].mxu0  ;;  %v397_v49 = vsel %vm389_vm3, %v375_v40, %v393_v43 }
 0x134   : > { %v380_v50 = vadd.f32 %v379_v48, %v235_v37  ;;  %v396_v51 = vsel %vm388_vm4, %v370_v42, %v392_v45 }
 0x135   : > { %vm391_vm5 = vcmp.ge.f32.partialorder %v385_v47, 0.0  ;;  %v395_v52 = vmul.f32 0.2, %v385_v47  ;;  %v1616_v53 = vpack.c.bf16 %v397_v49, %v396_v51 }
 0x136   : > { %vm390_vm6 = vcmp.ge.f32.partialorder %v380_v50, 0.0  ;;  %v394_v54 = vmul.f32 0.2, %v380_v50 }
 0x137   : > { %1617 = vmatprep.subr.bf16.mxu1 %v1616_v53  ;;  %v399_v55 = vsel %vm391_vm5, %v385_v47, %v395_v52 }
 0x138   : > { %1619 = vmatpush3.bf16.msra.mxu1 %v1616_v53  ;;  %v398_v56 = vsel %vm390_vm6, %v380_v50, %v394_v54  ;;  %v1343_v53 = vld [vmem:[%s2163_s2 + $0x48] sm:$0xff]  ;;  %v1344_v54 = vld [vmem:[%s2163_s2 + $0x50] sm:$0xff] }
 0x139   : > { %v1620_v57 = vpack.c.bf16 %v399_v55, %v398_v56  ;;  %v1345_v55 = vld [vmem:[%s2163_s2 + $0x58] sm:$0xff]  ;;  %v1350_v56 = vld [vmem:[%s2163_s2 + $0x60] sm:$0xff] }
 0x13b   : > { %1621 = vmatprep.subr.bf16.mxu1 %v1620_v57 }
 0x13c   : > { %1623 = vmatpush3.bf16.msra.mxu1 %v1620_v57  ;;  %v1802_v57 = vmov 4  }
 0x13d   : > { %1726 = vset.pattern.permute.xlu1 %v1802_v57  ;;  %1725 = vset.pattern.permute.xlu0 %v1802_v57 }
 0x13e   : > { %828 = vperm.xlu1 %1726, %v1903_v4   ;;  %824 = vperm.xlu0 %1725, %v1891_v2  }
 0x13f   : > { %1493 = vmatmul.mubr.msk.f32.vlgmr.msra.gmra.mrb[0].mxu1 %vm420_vm2, %v401_v58  ;;  %v1803_v58 = vmov 8  }
 0x140   : > { %1495 = vmatprep.mubr.msk.f32.mxu1 %vm420_vm2, %v402_v59  ;;  %v671_v59 = vpop.permute.xlu1 %670 }
 0x142   : > { %832 = vperm.xlu1 %1726, %v1897_v3   ;;  %836 = vperm.xlu0 %1725, %v1908_v5  }
 0x143   : > { %1496 = vmatmul.mubr.msk.f32.gmra.mrb[2].mxu1 %vm420_vm2, %v403_v60 }
 0x144   : > { %1506 = vmatprep.mubr.msk.f32.mxu1 %vm420_vm2, %v1334_v61  ;;  %v675_v60 = vpop.permute.xlu1 %674  ;;  %v667_v61 = vpop.permute.xlu0 %666 }
 0x146   : > { %1727 = vset.pattern.permute.xlu1 %v1803_v58  ;;  %1728 = vset.pattern.permute.xlu0 %v1803_v58 }
 0x147   : > { %953 = vperm.xlu1 %1727, %v1891_v2   ;;  %957 = vperm.xlu0 %1728, %v1903_v4  }
 0x148   : > { %v796_v62 = vpop.permute.xlu1 %795 }
 0x14b   : > { %961 = vperm.xlu1 %1727, %v1897_v3  }
 0x14f   : > { %965 = vperm.xlu1 %1727, %v1908_v5  }
 0x212   : > { %v1494_v1 = vpop.f32.mrb[0].mxu1 }
 0x213   : > { %v505_v6 = vadd.f32 %v1494_v1, %v410_v0  ;;  %v499_v7 = vpop.f32.mrb[1].mxu1  ;;  %v804_v0 = vpop.permute.xlu1 %803 }
 0x214   : > { %v500_v8 = vadd.f32 %v499_v7, %v406_v63  ;;  %v679_v63 = vpop.permute.xlu0 %678 }
 0x215   : > { %vm519_vm7 = vcmp.ge.f32.partialorder %v505_v6, 0.0  ;;  %v523_v9 = vmul.f32 0.2, %v505_v6 }
 0x216   : > { %vm518_vm8 = vcmp.ge.f32.partialorder %v500_v8, 0.0  ;;  %v522_v11 = vmul.f32 0.2, %v500_v8  ;;  %v1497_v12 = vpop.f32.mrb[2].mxu1 }
 0x217   : > { %v515_v14 = vadd.f32 %v1497_v12, %v418_v10  ;;  %v509_v15 = vpop.f32.mrb[3].mxu1  ;;  %v527_v16 = vsel %vm519_vm7, %v505_v6, %v523_v9 }
 0x218   : > { %v510_v17 = vadd.f32 %v509_v15, %v414_v13  ;;  %v526_v18 = vsel %vm518_vm8, %v500_v8, %v522_v11  ;;  %v800_v8 = vpop.permute.xlu0 %799 }
 0x219   : > { %vm521_vm9 = vcmp.ge.f32.partialorder %v515_v14, 0.0  ;;  %v525_v19 = vmul.f32 0.2, %v515_v14  ;;  %v1624_v20 = vpack.c.bf16 %v527_v16, %v526_v18 }
 0x21a   : > { %vm520_vm10 = vcmp.ge.f32.partialorder %v510_v17, 0.0  ;;  %v524_v21 = vmul.f32 0.2, %v510_v17 }
 0x21b   : > { %1625 = vmatprep.subr.bf16.mxu1 %v1624_v20  ;;  %v529_v22 = vsel %vm521_vm9, %v515_v14, %v525_v19 }
 0x21c   : > { %1627 = vmatpush3.bf16.msra.mxu1 %v1624_v20  ;;  %v528_v23 = vsel %vm520_vm10, %v510_v17, %v524_v21  ;;  %v808_v21 = vpop.permute.xlu1 %807 }
 0x21d   : > { %v1628_v24 = vpack.c.bf16 %v529_v22, %v528_v23 }
 0x21f   : > { %1629 = vmatprep.subr.bf16.mxu1 %v1628_v24 }
 0x220   : > { %1631 = vmatpush3.bf16.msra.mxu1 %v1628_v24 }
 0x223   : > { %1507 = vmatmul.mubr.msk.f32.vlgmr.msra.gmra.mrb[4].mxu1 %vm420_vm2, %v1335_v25 }
 0x224   : > { %1509 = vmatprep.mubr.msk.f32.mxu1 %vm420_vm2, %v1336_v26 }
 0x227   : > { %1510 = vmatmul.mubr.msk.f32.gmra.mrb[6].mxu1 %vm420_vm2, %v1337_v27 }
 0x228   : > { %1520 = vmatprep.mubr.msk.f32.mxu1 %vm420_vm2, %v1342_v28 }
 0x2f6   : > { %v1508_v34 = vpop.f32.mrb[4].mxu1 }
 0x2f7   : > { %v635_v35 = vadd.f32 %v1508_v34, %v541_v33  ;;  %v629_v36 = vpop.f32.mrb[5].mxu1  ;;  %v1351_v33 = vld [vmem:[%s2163_s2 + $0x68] sm:$0xff]  ;;  %v1352_v34 = vld [vmem:[%s2163_s2 + $0x70] sm:$0xff] }
 0x2f8   : > { %v630_v37 = vadd.f32 %v629_v36, %v537_v31  ;;  %v1358_v36 = vld [vmem:[%s2163_s2 + $0x80] sm:$0xff] }
 0x2f9   : > { %vm649_vm11 = vcmp.ge.f32.partialorder %v635_v35, 0.0  ;;  %v653_v38 = vmul.f32 0.2, %v635_v35 }
 0x2fa   : > { %vm648_vm12 = vcmp.ge.f32.partialorder %v630_v37, 0.0  ;;  %v652_v40 = vmul.f32 0.2, %v630_v37  ;;  %v1511_v41 = vpop.f32.mrb[6].mxu1 }
 0x2fb   : > { %v645_v42 = vadd.f32 %v1511_v41, %v549_v39  ;;  %v639_v43 = vpop.f32.mrb[7].mxu1  ;;  %v657_v44 = vsel %vm649_vm11, %v635_v35, %v653_v38  ;;  %v1353_v35 = vld [vmem:[%s2163_s2 + $0x78] sm:$0xff]  ;;  %v829_v38 = vpop.permute.xlu1 %828 }
 0x2fc   : > { %v640_v45 = vadd.f32 %v639_v43, %v545_v32  ;;  %v656_v46 = vsel %vm648_vm12, %v630_v37, %v652_v40  ;;  %v1804_v37 = vmov 5   ;;  %v825_v40 = vpop.permute.xlu0 %824 }
 0x2fd   : > { %vm651_vm13 = vcmp.ge.f32.partialorder %v645_v42, 0.0  ;;  %v655_v47 = vmul.f32 0.2, %v645_v42  ;;  %v1632_v48 = vpack.c.bf16 %v657_v44, %v656_v46  ;;  %1730 = vset.pattern.permute.xlu1 %v1804_v37  ;;  %1729 = vset.pattern.permute.xlu0 %v1804_v37  ;;  %v1369_v37 = vld [vmem:[%s2163_s2 + $0xb8] sm:$0xff] }
 0x2fe   : > { %vm650_vm14 = vcmp.ge.f32.partialorder %v640_v45, 0.0  ;;  %v654_v49 = vmul.f32 0.2, %v640_v45  ;;  %986 = vperm.xlu1 %1730, %v1903_v4   ;;  %982 = vperm.xlu0 %1729, %v1891_v2  }
 0x2ff   : > { %1633 = vmatprep.subr.bf16.mxu1 %v1632_v48  ;;  %v659_v50 = vsel %vm651_vm13, %v645_v42, %v655_v47  ;;  %v833_v39 = vpop.permute.xlu1 %832 }
 0x300   : > { %1635 = vmatpush3.bf16.msra.mxu1 %v1632_v48  ;;  %v658_v51 = vsel %vm650_vm14, %v640_v45, %v654_v49  ;;  %v837_v42 = vpop.permute.xlu0 %836 }
 0x301   : > { %v1636_v52 = vpack.c.bf16 %v659_v50, %v658_v51 }
 0x302   : > { %990 = vperm.xlu1 %1730, %v1897_v3   ;;  %994 = vperm.xlu0 %1729, %v1908_v5  }
 0x303   : > { %1637 = vmatprep.subr.bf16.mxu1 %v1636_v52  ;;  %v954_v41 = vpop.permute.xlu1 %953 }
 0x304   : > { %1639 = vmatpush3.bf16.msra.mxu1 %v1636_v52  ;;  %v958_v47 = vpop.permute.xlu0 %957 }
 0x307   : > { %1521 = vmatmul.mubr.msk.f32.vlgmr.msra.gmra.mrb[8].mxu1 %vm420_vm2, %v1343_v53  ;;  %v962_v43 = vpop.permute.xlu1 %961 }
 0x308   : > { %1523 = vmatprep.mubr.msk.f32.mxu1 %vm420_vm2, %v1344_v54 }
 0x30b   : > { %1524 = vmatmul.mubr.msk.f32.gmra.mrb[10].mxu1 %vm420_vm2, %v1345_v55 }
 0x30c   : > { %1534 = vmatprep.mubr.msk.f32.mxu1 %vm420_vm2, %v1350_v56 }
 0x3da   : > { %v1522_v1 = vpop.f32.mrb[8].mxu1 }
 0x3db   : > { %v765_v6 = vadd.f32 %v1522_v1, %v671_v59  ;;  %v759_v7 = vpop.f32.mrb[9].mxu1 }
 0x3dc   : > { %v760_v9 = vadd.f32 %v759_v7, %v667_v61 }
 0x3dd   : > { %vm779_vm15 = vcmp.ge.f32.partialorder %v765_v6, 0.0  ;;  %v783_v10 = vmul.f32 0.2, %v765_v6  ;;  %vm791_vm0 = vcmp.gt.f32.partialorder %v765_v6, 0.0 }
 0x3de   : > { %vm778_vm1 = vcmp.ge.f32.partialorder %v760_v9, 0.0  ;;  %v782_v11 = vmul.f32 0.2, %v760_v9  ;;  %vm790_vm3 = vcmp.gt.f32.partialorder %v760_v9, 0.0  ;;  %v811_v12 = vsel %vm791_vm0, %v800_v8, 0.0  ;;  %v1525_v13 = vpop.f32.mrb[10].mxu1 }
 0x3df   : > { %v787_v14 = vsel %vm779_vm15, %v765_v6, %v783_v10  ;;  %v810_v15 = vsel %vm790_vm3, %v796_v62, 0.0  ;;  %v775_v16 = vadd.f32 %v1525_v13, %v679_v63  ;;  %v769_v17 = vpop.f32.mrb[11].mxu1  ;;  %v1360_v13 = vld [vmem:[%s2163_s2 + $0x90] sm:$0xff] }
 0x3e0   : > { %v786_v18 = vsel %vm778_vm1, %v760_v9, %v782_v11  ;;  %v815_v19 = vadd.f32 %v811_v12, %v787_v14  ;;  %v770_v20 = vadd.f32 %v769_v17, %v675_v60  ;;  %v966_v60 = vpop.permute.xlu1 %965  ;;  %v1359_v12 = vld [vmem:[%s2163_s2 + $0x88] sm:$0xff]  ;;  %v1361_v14 = vld [vmem:[%s2163_s2 + $0x98] sm:$0xff]  ;;  %v983_v17 = vpop.permute.xlu0 %982 }
 0x3e1   : > { %v814_v22 = vadd.f32 %v810_v15, %v786_v18  ;;  %vm781_vm4 = vcmp.ge.f32.partialorder %v775_v16, 0.0  ;;  %v785_v23 = vmul.f32 0.2, %v775_v16  ;;  %vm793_vm5 = vcmp.gt.f32.partialorder %v775_v16, 0.0  ;;  %v1366_v15 = vld [vmem:[%s2163_s2 + $0xa0] sm:$0xff] }
 0x3e2   : > { %vm780_vm6 = vcmp.ge.f32.partialorder %v770_v20, 0.0  ;;  %v784_v24 = vmul.f32 0.2, %v770_v20  ;;  %vm792_vm7 = vcmp.gt.f32.partialorder %v770_v20, 0.0  ;;  %v813_v25 = vsel %vm793_vm5, %v808_v21, 0.0 }
 0x3e3   : > { %v1640_v26 = vpack.c.bf16 %v815_v19, %v814_v22  ;;  %v789_v27 = vsel %vm781_vm4, %v775_v16, %v785_v23  ;;  %v812_v28 = vsel %vm792_vm7, %v804_v0, 0.0  ;;  %v1805_v16 = vmov 6  }
 0x3e4   : > { %v788_v29 = vsel %vm780_vm6, %v770_v20, %v784_v24  ;;  %v817_v30 = vadd.f32 %v813_v25, %v789_v27  ;;  %1731 = vset.pattern.permute.xlu1 %v1805_v16  ;;  %1732 = vset.pattern.permute.xlu0 %v1805_v16  ;;  %v987_v18 = vpop.permute.xlu1 %986  ;;  %v995_v24 = vpop.permute.xlu0 %994 }
 0x3e5   : > { %1641 = vmatprep.subr.bf16.mxu1 %v1640_v26  ;;  %v816_v31 = vadd.f32 %v812_v28, %v788_v29  ;;  %1112 = vperm.xlu1 %1731, %v1891_v2  }
 0x3e6   : > { %1643 = vmatpush3.bf16.msra.mxu1 %v1640_v26  ;;  %1116 = vperm.xlu0 %1732, %v1903_v4  }
 0x3e7   : > { %v1644_v32 = vpack.c.bf16 %v817_v30, %v816_v31 }
 0x3e8   : > { %v991_v27 = vpop.permute.xlu1 %990 }
 0x3e9   : > { %1645 = vmatprep.subr.bf16.mxu1 %v1644_v32  ;;  %1120 = vperm.xlu1 %1731, %v1897_v3  }
 0x3ea   : > { %1647 = vmatpush3.bf16.msra.mxu1 %v1644_v32 }
 0x3ed   : > { %1535 = vmatmul.mubr.msk.f32.vlgmr.msra.gmra.mrb[12].mxu1 %vm420_vm2, %v1351_v33  ;;  %1124 = vperm.xlu1 %1731, %v1908_v5  }
 0x3ee   : > { %1537 = vmatprep.mubr.msk.f32.mxu1 %vm420_vm2, %v1352_v34 }
 0x3f1   : > { %1538 = vmatmul.mubr.msk.f32.gmra.mrb[14].mxu1 %vm420_vm2, %v1353_v35  ;;  %v1367_v35 = vld [vmem:[%s2163_s2 + $0xa8] sm:$0xff] }
 0x3f2   : > { %1548 = vmatprep.mubr.msk.f32.mxu1 %vm420_vm2, %v1358_v36  ;;  %v1368_v36 = vld [vmem:[%s2163_s2 + $0xb0] sm:$0xff] }
 0x4c0   : > { %v1536_v44 = vpop.f32.mrb[12].mxu1 }
 0x4c1   : > { %v923_v45 = vadd.f32 %v1536_v44, %v829_v38  ;;  %v917_v46 = vpop.f32.mrb[13].mxu1  ;;  %v1113_v38 = vpop.permute.xlu1 %1112 }
 0x4c2   : > { %v918_v48 = vadd.f32 %v917_v46, %v825_v40  ;;  %v1117_v40 = vpop.permute.xlu0 %1116 }
 0x4c3   : > { %vm937_vm8 = vcmp.ge.f32.partialorder %v923_v45, 0.0  ;;  %v941_v49 = vmul.f32 0.2, %v923_v45  ;;  %vm949_vm9 = vcmp.gt.f32.partialorder %v923_v45, 0.0 }
 0x4c4   : > { %vm936_vm10 = vcmp.ge.f32.partialorder %v918_v48, 0.0  ;;  %v940_v50 = vmul.f32 0.2, %v918_v48  ;;  %vm948_vm11 = vcmp.gt.f32.partialorder %v918_v48, 0.0  ;;  %v969_v51 = vsel %vm949_vm9, %v958_v47, 0.0  ;;  %v1539_v52 = vpop.f32.mrb[14].mxu1 }
 0x4c5   : > { %v945_v53 = vsel %vm937_vm8, %v923_v45, %v941_v49  ;;  %v968_v54 = vsel %vm948_vm11, %v954_v41, 0.0  ;;  %v933_v55 = vadd.f32 %v1539_v52, %v837_v42  ;;  %v927_v56 = vpop.f32.mrb[15].mxu1 }
 0x4c6   : > { %v944_v57 = vsel %vm936_vm10, %v918_v48, %v940_v50  ;;  %v973_v58 = vadd.f32 %v969_v51, %v945_v53  ;;  %v928_v59 = vadd.f32 %v927_v56, %v833_v39  ;;  %v1121_v39 = vpop.permute.xlu1 %1120 }
 0x4c7   : > { %v972_v61 = vadd.f32 %v968_v54, %v944_v57  ;;  %vm939_vm12 = vcmp.ge.f32.partialorder %v933_v55, 0.0  ;;  %v943_v62 = vmul.f32 0.2, %v933_v55  ;;  %vm951_vm13 = vcmp.gt.f32.partialorder %v933_v55, 0.0 }
 0x4c8   : > { %vm938_vm14 = vcmp.ge.f32.partialorder %v928_v59, 0.0  ;;  %v942_v63 = vmul.f32 0.2, %v928_v59  ;;  %vm950_vm15 = vcmp.gt.f32.partialorder %v928_v59, 0.0  ;;  %v971_v0 = vsel %vm951_vm13, %v966_v60, 0.0 }
 0x4c9   : > { %v1648_v1 = vpack.c.bf16 %v973_v58, %v972_v61  ;;  %v947_v6 = vsel %vm939_vm12, %v933_v55, %v943_v62  ;;  %v970_v7 = vsel %vm950_vm15, %v962_v43, 0.0 }
 0x4ca   : > { %v946_v8 = vsel %vm938_vm14, %v928_v59, %v942_v63  ;;  %v975_v9 = vadd.f32 %v971_v0, %v947_v6  ;;  %v1125_v45 = vpop.permute.xlu1 %1124 }
 0x4cb   : > { %1649 = vmatprep.subr.bf16.mxu1 %v1648_v1  ;;  %v974_v10 = vadd.f32 %v970_v7, %v946_v8 }
 0x4cc   : > { %1651 = vmatpush3.bf16.msra.mxu1 %v1648_v1 }
 0x4cd   : > { %v1652_v11 = vpack.c.bf16 %v975_v9, %v974_v10 }
 0x4cf   : > { %1653 = vmatprep.subr.bf16.mxu1 %v1652_v11 }
 0x4d0   : > { %1655 = vmatpush3.bf16.msra.mxu1 %v1652_v11 }
 0x4d3   : > { %1549 = vmatmul.mubr.msk.f32.vlgmr.msra.gmra.mrb[16].mxu1 %vm420_vm2, %v1359_v12 }
 0x4d4   : > { %1551 = vmatprep.mubr.msk.f32.mxu1 %vm420_vm2, %v1360_v13 }
 0x4d7   : > { %1552 = vmatmul.mubr.msk.f32.gmra.mrb[18].mxu1 %vm420_vm2, %v1361_v14 }
 0x4d8   : > { %1562 = vmatprep.mubr.msk.f32.mxu1 %vm420_vm2, %v1366_v15 }
 0x5a6   : > { %v1550_v19 = vpop.f32.mrb[16].mxu1 }
 0x5a7   : > { %v1081_v20 = vadd.f32 %v1550_v19, %v987_v18  ;;  %v1075_v21 = vpop.f32.mrb[17].mxu1 }
 0x5a8   : > { %v1076_v22 = vadd.f32 %v1075_v21, %v983_v17 }
 0x5a9   : > { %vm1095_vm0 = vcmp.ge.f32.partialorder %v1081_v20, 0.0  ;;  %v1099_v23 = vmul.f32 0.2, %v1081_v20 }
 0x5aa   : > { %vm1094_vm1 = vcmp.ge.f32.partialorder %v1076_v22, 0.0  ;;  %v1098_v25 = vmul.f32 0.2, %v1076_v22  ;;  %v1553_v26 = vpop.f32.mrb[18].mxu1 }
 0x5ab   : > { %v1091_v2 = vadd.f32 %v1553_v26, %v995_v24  ;;  %v1085_v28 = vpop.f32.mrb[19].mxu1  ;;  %v1103_v4 = vsel %vm1095_vm0, %v1081_v20, %v1099_v23 }
 0x5ac   : > { %v1086_v29 = vadd.f32 %v1085_v28, %v991_v27  ;;  %v1102_v3 = vsel %vm1094_vm1, %v1076_v22, %v1098_v25 }
 0x5ad   : > { %vm1097_vm3 = vcmp.ge.f32.partialorder %v1091_v2, 0.0  ;;  %v1101_v5 = vmul.f32 0.2, %v1091_v2  ;;  %v1656_v30 = vpack.c.bf16 %v1103_v4, %v1102_v3 }
 0x5ae   : > { %vm1096_vm4 = vcmp.ge.f32.partialorder %v1086_v29, 0.0  ;;  %v1100_v31 = vmul.f32 0.2, %v1086_v29 }
 0x5af   : > { %1657 = vmatprep.subr.bf16.mxu1 %v1656_v30  ;;  %v1105_v32 = vsel %vm1097_vm3, %v1091_v2, %v1101_v5 }
 0x5b0   : > { %1659 = vmatpush3.bf16.msra.mxu1 %v1656_v30  ;;  %v1104_v33 = vsel %vm1096_vm4, %v1086_v29, %v1100_v31 }
 0x5b1   : > { %v1660_v34 = vpack.c.bf16 %v1105_v32, %v1104_v33 }
 0x5b3   : > { %1661 = vmatprep.subr.bf16.mxu1 %v1660_v34 }
 0x5b4   : > { %1663 = vmatpush3.bf16.msra.mxu1 %v1660_v34 }
 0x5b7   : > { %1563 = vmatmul.mubr.msk.f32.vlgmr.msra.gmra.mrb[20].mxu1 %vm420_vm2, %v1367_v35 }
 0x5b8   : > { %1565 = vmatprep.mubr.msk.f32.mxu1 %vm420_vm2, %v1368_v36 }
 0x5bb   : > { %1566 = vmatmul.mubr.msk.f32.gmra.mrb[22].mxu1 %vm420_vm2, %v1369_v37 }
 0x68a   : > { %v1564_v41 = vpop.f32.mrb[20].mxu1 }
 0x68b   : > { %v1211_v42 = vadd.f32 %v1564_v41, %v1117_v40  ;;  %v1205_v43 = vpop.f32.mrb[21].mxu1 }
 0x68c   : > { %v1206_v44 = vadd.f32 %v1205_v43, %v1113_v38 }
 0x68d   : > { %1225 = vst [vmem:[%s191_s30 + $0x8] sm:$0xff] %v1211_v42 }
 0x68e   : > { %1224 = vst [vmem:[%s191_s30] sm:$0xff] %v1206_v44  ;;  %v1567_v46 = vpop.f32.mrb[22].mxu1 }
 0x68f   : > { %v1221_v47 = vadd.f32 %v1567_v46, %v1125_v45  ;;  %v1215_v48 = vpop.f32.mrb[23].mxu1 }
 0x690   : > { %v1216_v49 = vadd.f32 %v1215_v48, %v1121_v39 }
 0x691   : > { %1227 = vst [vmem:[%s191_s30 + $0x18] sm:$0xff] %v1221_v47 }
 0x692   : > { %1226 = vst [vmem:[%s191_s30 + $0x10] sm:$0xff] %v1216_v49 }
 0x693   : > { %1746 = shalt.err (!%p1743_p3)
}
 0x694   : > { %s1747_s14 = scalar_lea.hbm %s2118_s9, 512  ;;  %s1751_s23 = scalar_lea.hbm %s2165_s4, 1024 }
 0x695   : > { %p1748_p4 = scmp.ne.s32.totalorder %s2118_s9, %s1747_s14  ;;  %p1752_p9 = scmp.lt.u32.totalorder %s2118_s9, %s2165_s4 }
 0x696   : > { %p1753_p10 = scmp.lt.u32.totalorder %s1751_s23, %s1747_s14  ;;  %p1755_p12 = scmp.lt.u32.totalorder %s1747_s14, %s2118_s9 }
 0x697   : > { %p1749_p7 = pnand %p1748_p4, %p1873_p5 }
 0x698   : > { %p1754_p11 = por %p1753_p10, %p1752_p9 }
 0x699   : > { %p1750_p8 = pneg %p1749_p7 }
 0x69a   : > { %p1756_p13 = por %p1755_p12, %p1754_p11 }
 0x69c   : > { %p1757_p0 = pnand %p1756_p13, %p1750_p8 }
 0x69e   : > { %1760 = shalt.err (!%p1757_p0)
}
 0x69f   : > { %s1807_s29 = smov 128   ;;  %s1808_s30 = smov 256  }
 0x6a0   : > { %s1809_s6 = smov 8  }
 0x6a1   : > { %1664 = dma.vmem_to_hbm [thread:$0]  (%p1873_p5), %s2113_s5, 512, %s2118_s9, %s2120_s19, %s1807_s29, %s1808_s30, %s1809_s6  }
 0x6a2 PF: > { %p1670_p1 = scmp.ge.s32.totalorder %s1795_s18, 2  ;;  %s1256_s7 = sand.u32 1, %s1783_s15  }
 0x6a3   : > { %s1257_s8 = scalar_lea.sflag [#allocation3], %s1256_s7 }
 0x6a4   : > { %p1667_p2 = pnand %p1670_p1, %p1877_p6 }
 0x6a6   : > { %1778 = dma.done.wait (!%p1667_p2), %s1257_s8, 512  }
 0x6a7   : > { %1780 = vsyncadd (!%p1667_p2), %s1257_s8, 4294966784  ;;  %p14_p3 = scmp.ge.s32.totalorder %s1860_s21, 4   ;;  %s2170_s15 = smov %s1787_s16 }
 0x6a8   : > { %s2171_s16 = smov %s1791_s17  ;;  %s2172_s17 = smov %s1871_s24 }
 0x6a9   : > { %s2173_s18 = smov %s1860_s21  ;;  %16 = sbr.rel (!%p14_p3) target bundleno = 3 (0x3), region = 76 }
 0x6b0   :  { %1262 = vsyncpa [#allocation3], 1 }
 0x6b1   :  { %1264 = vsyncpa [#allocation3 + $0x1], 1 }

</bundles_post_ra>
